<compile_context>
chip_gen: v7x
topology: tpu7x:2x2x1
jax: 0.10.0
libtpu: 0.0.40
codegen_flags: <defaults>
</compile_context>

<pallas_src>
import jax
import jax.numpy as jnp
import numpy as np
from jax import lax
from jax.experimental import pallas as pl
from jax.experimental.pallas import tpu as pltpu


def type_model_kernel(x_ref, params_ref, out_ref):
    # x_ref:      (T, D_in) f32
    # params_ref: (D_in + 2H + 8 + 2H + 8, 8H) f32 slab:
    #   rows [0, D_in)              : w_ih   (D_in, 8H)   gates [f|i|o|g], dirs [fwd|rev]
    #   rows [D_in, D_in+2H)        : w_hh   (2H, 8H)     block-diag over direction
    #   row   D_in+2H               : bias   (1, 8H)      (b_ih + b_hh), 0.5-scaled f/i/o
    #   rows [D_in+2H+8, ..+2H)     : w_out  (2H, 8H)     cols 0..2 real, rest 0
    #   next row                    : b_out  (1, 8H)      cols 0..2 real, rest 0
    # out_ref:    (1, 8H) f32 (only cols 0..2 meaningful)
    T, D_in = x_ref.shape
    G = params_ref.shape[1]          # 8H = 256 gate lanes
    H2 = G // 4                      # 2H = 64 packed hidden width [fwd|rev]
    bf16, f32 = jnp.bfloat16, jnp.float32

    r_hh = D_in
    r_b = r_hh + H2
    r_out = r_b + 8
    r_bo = r_out + H2

    w_ih = params_ref[0:r_hh, :].astype(bf16)        # (D_in, 8H)
    w_hh = params_ref[r_hh:r_b, :].astype(bf16)      # (2H, 8H)
    bias = params_ref[r_b:r_b + 1, :]                # (1, 8H) f32
    w_out = params_ref[r_out:r_bo, :]                # (2H, 8H) f32
    b_out = params_ref[r_bo:r_bo + 1, :]             # (1, 8H) f32

    # Hoisted input projection (bias folded in). Row t holds both directions'
    # gate pre-activations computed from x[t]; the fwd/rev *time* pairing is
    # resolved per step by a lane select (fwd lanes <- row t, rev lanes <- row T-1-t).
    xg = jnp.dot(x_ref[...].astype(bf16), w_ih,
                 preferred_element_type=f32) + bias              # (T, 8H)

    lane = lax.broadcasted_iota(jnp.int32, (1, G), 1)
    fwd_lane = (lane % H2) < (H2 // 2)                           # fwd half of each gate block
    lo_half = lax.broadcasted_iota(jnp.int32, (1, 2 * H2), 1) < H2

    h = jnp.zeros((1, H2), f32)          # [h_fwd | h_rev]
    c = jnp.zeros((1, 2 * H2), f32)      # [c | c] duplicated across 64-lane halves

    # Fully unrolled recurrence (T=8). Serial critical path per step:
    # bf16 cast -> one (1,2H)@(2H,8H) MXU dot -> tanh(256) -> aligned VALU ->
    # single roll -> tanh(128) -> VALU.
    for t in range(T):
        xg_t = jnp.where(fwd_lane, xg[t:t + 1, :], xg[T - 1 - t:T - t, :])
        z = xg_t + jnp.dot(h.astype(bf16), w_hh, preferred_element_type=f32)

        th = jnp.tanh(z)                             # one wide tanh for all gates
        fi = th[:, :2 * H2] * 0.5 + 0.5              # [sig(f) | sig(i)]
        og = th[:, 2 * H2:]                          # [tanh(o/2) | tanh(g)] (raw)

        cg = jnp.where(lo_half, c, og)               # [c | g]          (VALU select)
        prod = fi * cg                               # [f*c | i*g]      (lane-aligned)
        c = prod + pltpu.roll(prod, shift=H2, axis=1)   # [c_new | c_new] (one XLU roll)
        tc = jnp.tanh(c)
        h = (og[:, :H2] * 0.5 + 0.5) * tc[:, :H2]    # o * tanh(c), already aligned

    # hidden = reshape(h_n, (1, 2H)) = [h_fwd_final | h_rev_final] = h.
    # TODO(synk): nn.Dropout(p=0.35) is stochastic in train mode (PyTorch RNG);
    # implemented here as eval-mode identity.
    out_ref[...] = jnp.dot(h, w_out, preferred_element_type=f32) + b_out


def type_model_forward(x, params_slab):
    G = params_slab.shape[1]
    vmem = lambda: pl.BlockSpec(memory_space=pltpu.MemorySpace.VMEM)
    out = pl.pallas_call(
        type_model_kernel,
        out_shape=jax.ShapeDtypeStruct((1, G), jnp.float32),
        in_specs=[vmem(), vmem()],
        out_specs=vmem(),
    )(x, params_slab)
    return out[:, :3]


def pack_params(p, H, D_in):
    """Pack PyTorch-layout LSTM/Linear weights into one contiguous f32 slab.

    Lane layout: 4 gate blocks of 2H lanes in order [f, i, o, g]; within each
    block [fwd (H lanes) | rev (H lanes)]. f/i/o weight columns and biases are
    pre-scaled by 0.5 so sigmoid(x) = 0.5*tanh(0.5*x)+0.5 is a single tanh
    in-kernel. Row starts in the slab are multiples of 8 (sublane-aligned)."""
    order = (1, 0, 3, 2)            # PyTorch row-block index (i,f,g,o) for gates f,i,o,g
    scales = (0.5, 0.5, 0.5, 1.0)   # sigmoid gates pre-scaled; g (tanh) not

    def blk(w, gidx):               # (4H, K) -> (K, H)
        return w[gidx * H:(gidx + 1) * H, :].T

    b_f = p["b_ih_f"] + p["b_hh_f"]
    b_r = p["b_ih_r"] + p["b_hh_r"]
    zH = jnp.zeros((H, H), jnp.float32)

    ih_cols, hh_cols, b_segs = [], [], []
    for gidx, s in zip(order, scales):
        ih_cols += [s * blk(p["w_ih_f"], gidx), s * blk(p["w_ih_r"], gidx)]
        hh_cols += [jnp.concatenate([s * blk(p["w_hh_f"], gidx), zH], axis=0),
                    jnp.concatenate([zH, s * blk(p["w_hh_r"], gidx)], axis=0)]
        b_segs += [s * b_f[gidx * H:(gidx + 1) * H],
                   s * b_r[gidx * H:(gidx + 1) * H]]

    G = 8 * H
    w_ih = jnp.concatenate(ih_cols, axis=1)              # (D_in, 8H)
    w_hh = jnp.concatenate(hh_cols, axis=1)              # (2H, 8H)
    bias = jnp.concatenate(b_segs).reshape(1, G)         # (1, 8H)
    w_out = jnp.zeros((2 * H, G), jnp.float32).at[:, :3].set(p["w_h2o"].T)
    b_out = jnp.zeros((1, G), jnp.float32).at[0, :3].set(p["b_h2o"])

    def pad_rows(a, rows):
        return jnp.concatenate(
            [a, jnp.zeros((rows - a.shape[0], a.shape[1]), a.dtype)], axis=0)

    slab = jnp.concatenate([
        w_ih,                 # rows [0, D_in)
        w_hh,                 # rows [D_in, D_in+2H)
        pad_rows(bias, 8),    # bias at row D_in+2H
        w_out,                # rows [D_in+2H+8, +2H)
        pad_rows(b_out, 8),   # b_out at next row
    ], axis=0)                # (D_in + 4H + 16, 8H) = (160, 256) for D_in=16, H=32
    return slab


def ref_forward(x, p, H):
    """Pure-JAX reference mirroring PyTorch nn.LSTM(bidirectional) + Linear."""
    def make_step(w_ih, w_hh, b):
        def step(carry, x_t):
            h, c = carry
            gates = x_t @ w_ih.T + h @ w_hh.T + b
            i = jax.nn.sigmoid(gates[:H])
            f = jax.nn.sigmoid(gates[H:2 * H])
            g = jnp.tanh(gates[2 * H:3 * H])
            o = jax.nn.sigmoid(gates[3 * H:])
            c = f * c + i * g
            h = o * jnp.tanh(c)
            return (h, c), h
        return step

    h0 = jnp.zeros((H,), jnp.float32)
    (h_f, _), _ = lax.scan(
        make_step(p["w_ih_f"], p["w_hh_f"], p["b_ih_f"] + p["b_hh_f"]),
        (h0, h0), x)
    (h_r, _), _ = lax.scan(
        make_step(p["w_ih_r"], p["w_hh_r"], p["b_ih_r"] + p["b_hh_r"]),
        (h0, h0), x[::-1])
    hidden = jnp.concatenate([h_f, h_r]).reshape(1, 2 * H)   # dropout = identity (eval)
    return hidden @ p["w_h2o"].T + p["b_h2o"].reshape(1, 3)


if __name__ == "__main__":
    D_in, H, T = 16, 32, 8   # input_size=16, hidden_size=32, seq_len=8

    key = jax.random.PRNGKey(0)
    ks = jax.random.split(key, 11)
    bnd_l = 1.0 / np.sqrt(H)
    bnd_o = 1.0 / np.sqrt(2 * H)

    def u(k_, shape, b):
        return jax.random.uniform(k_, shape, jnp.float32, -b, b)

    # Deterministic synthetic parameters with PyTorch's shapes / gate order (i,f,g,o).
    p = dict(
        w_ih_f=u(ks[0], (4 * H, D_in), bnd_l), w_hh_f=u(ks[1], (4 * H, H), bnd_l),
        b_ih_f=u(ks[2], (4 * H,), bnd_l),      b_hh_f=u(ks[3], (4 * H,), bnd_l),
        w_ih_r=u(ks[4], (4 * H, D_in), bnd_l), w_hh_r=u(ks[5], (4 * H, H), bnd_l),
        b_ih_r=u(ks[6], (4 * H,), bnd_l),      b_hh_r=u(ks[7], (4 * H,), bnd_l),
        w_h2o=u(ks[8], (3, 2 * H), bnd_o),     b_h2o=u(ks[9], (3,), bnd_o),
    )
    x = jax.random.normal(ks[10], (T, D_in), jnp.float32)

    params_slab = pack_params(p, H, D_in)

    fwd = jax.jit(type_model_forward)
    out = jax.block_until_ready(fwd(x, params_slab))

    ref = jax.block_until_ready(ref_forward(x, p, H))

    assert out.shape == (1, 3) and out.dtype == jnp.float32
    # bf16 MXU operands in the recurrence -> slightly looser tolerance vs f32 ref.
    np.testing.assert_allclose(np.asarray(out), np.asarray(ref),
                               rtol=2e-2, atol=2e-2)
    print("KERNEL_OK")
</pallas_src>

<mosaic_0001>
module attributes {stable_mosaic.version = 11 : i64} {
  func.func @type_model_kernel(%arg0: memref<8x16xf32, #tpu.memory_space<vmem>>, %arg1: memref<160x256xf32, #tpu.memory_space<vmem>>, %arg2: memref<1x256xf32, #tpu.memory_space<vmem>>) attributes {dimension_semantics = [], scalar_prefetch = 0 : i64, scratch_operands = 0 : i64, tpu.core_type = #tpu.core_type<tc>} {
    %c0 = arith.constant 0 : index
    %c0_0 = arith.constant 0 : index
    %0 = vector.load %arg1[%c0, %c0_0] : memref<160x256xf32, #tpu.memory_space<vmem>>, vector<16x256xf32>
    %1 = arith.truncf %0 : vector<16x256xf32> to vector<16x256xbf16>
    %c16 = arith.constant 16 : index
    %c0_1 = arith.constant 0 : index
    %2 = vector.load %arg1[%c16, %c0_1] : memref<160x256xf32, #tpu.memory_space<vmem>>, vector<64x256xf32>
    %3 = arith.truncf %2 : vector<64x256xf32> to vector<64x256xbf16>
    %c80 = arith.constant 80 : index
    %c0_2 = arith.constant 0 : index
    %4 = vector.load %arg1[%c80, %c0_2] : memref<160x256xf32, #tpu.memory_space<vmem>>, vector<1x256xf32>
    %c88 = arith.constant 88 : index
    %c0_3 = arith.constant 0 : index
    %5 = vector.load %arg1[%c88, %c0_3] : memref<160x256xf32, #tpu.memory_space<vmem>>, vector<64x256xf32>
    %c152 = arith.constant 152 : index
    %c0_4 = arith.constant 0 : index
    %6 = vector.load %arg1[%c152, %c0_4] : memref<160x256xf32, #tpu.memory_space<vmem>>, vector<1x256xf32>
    %c0_5 = arith.constant 0 : index
    %c0_6 = arith.constant 0 : index
    %7 = vector.load %arg0[%c0_5, %c0_6] : memref<8x16xf32, #tpu.memory_space<vmem>>, vector<8x16xf32>
    %8 = arith.truncf %7 : vector<8x16xf32> to vector<8x16xbf16>
    %cst = arith.constant dense<0.000000e+00> : vector<8x256xf32>
    %9 = tpu.matmul %8, %1, %cst {dimension_numbers = #tpu.dot_dimension_numbers<[1], [0], [0], [1], [0, 0, 1, 1], [], []>} : vector<8x16xbf16>, vector<16x256xbf16>, vector<8x256xf32> -> vector<8x256xf32>
    %10 = vector.broadcast %4 : vector<1x256xf32> to vector<8x256xf32>
    %11 = arith.addf %9, %10 : vector<8x256xf32>
    %12 = tpu.iota {dimensions = array<i32: 1>} : vector<1x256xi32>
    %c64_i32 = arith.constant 64 : i32
    %c0_i32 = arith.constant 0 : i32
    %13 = arith.cmpi eq, %c64_i32, %c0_i32 : i32
    %c1_i32 = arith.constant 1 : i32
    %14 = arith.select %13, %c1_i32, %c64_i32 : i32
    %15 = vector.broadcast %14 : i32 to vector<1x256xi32>
    %16 = arith.remsi %12, %15 : vector<1x256xi32>
    %c0_i32_7 = arith.constant 0 : i32
    %17 = vector.broadcast %c0_i32_7 : i32 to vector<1x256xi32>
    %18 = arith.cmpi ne, %16, %17 : vector<1x256xi32>
    %c0_i32_8 = arith.constant 0 : i32
    %19 = vector.broadcast %c0_i32_8 : i32 to vector<1x256xi32>
    %20 = arith.cmpi slt, %16, %19 : vector<1x256xi32>
    %c0_i32_9 = arith.constant 0 : i32
    %21 = arith.cmpi slt, %14, %c0_i32_9 : i32
    %22 = vector.broadcast %21 : i1 to vector<1x256xi1>
    %23 = vector.broadcast %22 : vector<1x256xi1> to vector<1x256xi1>
    %24 = arith.xori %20, %23 : vector<1x256xi1>
    %25 = arith.andi %24, %18 : vector<1x256xi1>
    %26 = vector.broadcast %14 : i32 to vector<1x256xi32>
    %27 = arith.addi %16, %26 : vector<1x256xi32>
    %28 = arith.select %25, %27, %16 : vector<1x256xi1>, vector<1x256xi32>
    %c32_i32 = arith.constant 32 : i32
    %29 = vector.broadcast %c32_i32 : i32 to vector<1x256xi32>
    %30 = arith.cmpi slt, %28, %29 : vector<1x256xi32>
    %31 = tpu.iota {dimensions = array<i32: 1>} : vector<1x128xi32>
    %c64_i32_10 = arith.constant 64 : i32
    %32 = vector.broadcast %c64_i32_10 : i32 to vector<1x128xi32>
    %33 = arith.cmpi slt, %31, %32 : vector<1x128xi32>
    %cst_11 = arith.constant 0.000000e+00 : f32
    %34 = vector.broadcast %cst_11 : f32 to vector<1x64xf32>
    %cst_12 = arith.constant 0.000000e+00 : f32
    %35 = vector.broadcast %cst_12 : f32 to vector<1x128xf32>
    %36 = vector.extract_strided_slice %11 {offsets = [0, 0], sizes = [1, 256], strides = [1, 1]} : vector<8x256xf32> to vector<1x256xf32>
    %37 = vector.extract_strided_slice %11 {offsets = [7, 0], sizes = [1, 256], strides = [1, 1]} : vector<8x256xf32> to vector<1x256xf32>
    %38 = arith.select %30, %36, %37 : vector<1x256xi1>, vector<1x256xf32>
    %39 = arith.truncf %34 : vector<1x64xf32> to vector<1x64xbf16>
    %cst_13 = arith.constant dense<0.000000e+00> : vector<1x256xf32>
    %40 = tpu.matmul %39, %3, %cst_13 {dimension_numbers = #tpu.dot_dimension_numbers<[1], [0], [0], [1], [0, 0, 1, 1], [], []>} : vector<1x64xbf16>, vector<64x256xbf16>, vector<1x256xf32> -> vector<1x256xf32>
    %41 = arith.addf %38, %40 : vector<1x256xf32>
    %42 = math.tanh %41 : vector<1x256xf32>
    %43 = vector.extract_strided_slice %42 {offsets = [0, 0], sizes = [1, 128], strides = [1, 1]} : vector<1x256xf32> to vector<1x128xf32>
    %cst_14 = arith.constant 5.000000e-01 : f32
    %44 = vector.broadcast %cst_14 : f32 to vector<1x128xf32>
    %45 = arith.mulf %43, %44 : vector<1x128xf32>
    %cst_15 = arith.constant 5.000000e-01 : f32
    %46 = vector.broadcast %cst_15 : f32 to vector<1x128xf32>
    %47 = arith.addf %45, %46 : vector<1x128xf32>
    %48 = vector.extract_strided_slice %42 {offsets = [0, 128], sizes = [1, 128], strides = [1, 1]} : vector<1x256xf32> to vector<1x128xf32>
    %49 = arith.select %33, %35, %48 : vector<1x128xi1>, vector<1x128xf32>
    %50 = arith.mulf %47, %49 : vector<1x128xf32>
    %c64_i32_16 = arith.constant 64 : i32
    %51 = tpu.dynamic_rotate %50 by %c64_i32_16 dim 1 : vector<1x128xf32>, i32 -> vector<1x128xf32>
    %52 = arith.addf %50, %51 : vector<1x128xf32>
    %53 = math.tanh %52 : vector<1x128xf32>
    %54 = vector.extract_strided_slice %48 {offsets = [0, 0], sizes = [1, 64], strides = [1, 1]} : vector<1x128xf32> to vector<1x64xf32>
    %cst_17 = arith.constant 5.000000e-01 : f32
    %55 = vector.broadcast %cst_17 : f32 to vector<1x64xf32>
    %56 = arith.mulf %54, %55 : vector<1x64xf32>
    %cst_18 = arith.constant 5.000000e-01 : f32
    %57 = vector.broadcast %cst_18 : f32 to vector<1x64xf32>
    %58 = arith.addf %56, %57 : vector<1x64xf32>
    %59 = vector.extract_strided_slice %53 {offsets = [0, 0], sizes = [1, 64], strides = [1, 1]} : vector<1x128xf32> to vector<1x64xf32>
    %60 = arith.mulf %58, %59 : vector<1x64xf32>
    %61 = vector.extract_strided_slice %11 {offsets = [1, 0], sizes = [1, 256], strides = [1, 1]} : vector<8x256xf32> to vector<1x256xf32>
    %62 = vector.extract_strided_slice %11 {offsets = [6, 0], sizes = [1, 256], strides = [1, 1]} : vector<8x256xf32> to vector<1x256xf32>
    %63 = arith.select %30, %61, %62 : vector<1x256xi1>, vector<1x256xf32>
    %64 = arith.truncf %60 : vector<1x64xf32> to vector<1x64xbf16>
    %cst_19 = arith.constant dense<0.000000e+00> : vector<1x256xf32>
    %65 = tpu.matmul %64, %3, %cst_19 {dimension_numbers = #tpu.dot_dimension_numbers<[1], [0], [0], [1], [0, 0, 1, 1], [], []>} : vector<1x64xbf16>, vector<64x256xbf16>, vector<1x256xf32> -> vector<1x256xf32>
    %66 = arith.addf %63, %65 : vector<1x256xf32>
    %67 = math.tanh %66 : vector<1x256xf32>
    %68 = vector.extract_strided_slice %67 {offsets = [0, 0], sizes = [1, 128], strides = [1, 1]} : vector<1x256xf32> to vector<1x128xf32>
    %cst_20 = arith.constant 5.000000e-01 : f32
    %69 = vector.broadcast %cst_20 : f32 to vector<1x128xf32>
    %70 = arith.mulf %68, %69 : vector<1x128xf32>
    %cst_21 = arith.constant 5.000000e-01 : f32
    %71 = vector.broadcast %cst_21 : f32 to vector<1x128xf32>
    %72 = arith.addf %70, %71 : vector<1x128xf32>
    %73 = vector.extract_strided_slice %67 {offsets = [0, 128], sizes = [1, 128], strides = [1, 1]} : vector<1x256xf32> to vector<1x128xf32>
    %74 = arith.select %33, %52, %73 : vector<1x128xi1>, vector<1x128xf32>
    %75 = arith.mulf %72, %74 : vector<1x128xf32>
    %c64_i32_22 = arith.constant 64 : i32
    %76 = tpu.dynamic_rotate %75 by %c64_i32_22 dim 1 : vector<1x128xf32>, i32 -> vector<1x128xf32>
    %77 = arith.addf %75, %76 : vector<1x128xf32>
    %78 = math.tanh %77 : vector<1x128xf32>
    %79 = vector.extract_strided_slice %73 {offsets = [0, 0], sizes = [1, 64], strides = [1, 1]} : vector<1x128xf32> to vector<1x64xf32>
    %cst_23 = arith.constant 5.000000e-01 : f32
    %80 = vector.broadcast %cst_23 : f32 to vector<1x64xf32>
    %81 = arith.mulf %79, %80 : vector<1x64xf32>
    %cst_24 = arith.constant 5.000000e-01 : f32
    %82 = vector.broadcast %cst_24 : f32 to vector<1x64xf32>
    %83 = arith.addf %81, %82 : vector<1x64xf32>
    %84 = vector.extract_strided_slice %78 {offsets = [0, 0], sizes = [1, 64], strides = [1, 1]} : vector<1x128xf32> to vector<1x64xf32>
    %85 = arith.mulf %83, %84 : vector<1x64xf32>
    %86 = vector.extract_strided_slice %11 {offsets = [2, 0], sizes = [1, 256], strides = [1, 1]} : vector<8x256xf32> to vector<1x256xf32>
    %87 = vector.extract_strided_slice %11 {offsets = [5, 0], sizes = [1, 256], strides = [1, 1]} : vector<8x256xf32> to vector<1x256xf32>
    %88 = arith.select %30, %86, %87 : vector<1x256xi1>, vector<1x256xf32>
    %89 = arith.truncf %85 : vector<1x64xf32> to vector<1x64xbf16>
    %cst_25 = arith.constant dense<0.000000e+00> : vector<1x256xf32>
    %90 = tpu.matmul %89, %3, %cst_25 {dimension_numbers = #tpu.dot_dimension_numbers<[1], [0], [0], [1], [0, 0, 1, 1], [], []>} : vector<1x64xbf16>, vector<64x256xbf16>, vector<1x256xf32> -> vector<1x256xf32>
    %91 = arith.addf %88, %90 : vector<1x256xf32>
    %92 = math.tanh %91 : vector<1x256xf32>
    %93 = vector.extract_strided_slice %92 {offsets = [0, 0], sizes = [1, 128], strides = [1, 1]} : vector<1x256xf32> to vector<1x128xf32>
    %cst_26 = arith.constant 5.000000e-01 : f32
    %94 = vector.broadcast %cst_26 : f32 to vector<1x128xf32>
    %95 = arith.mulf %93, %94 : vector<1x128xf32>
    %cst_27 = arith.constant 5.000000e-01 : f32
    %96 = vector.broadcast %cst_27 : f32 to vector<1x128xf32>
    %97 = arith.addf %95, %96 : vector<1x128xf32>
    %98 = vector.extract_strided_slice %92 {offsets = [0, 128], sizes = [1, 128], strides = [1, 1]} : vector<1x256xf32> to vector<1x128xf32>
    %99 = arith.select %33, %77, %98 : vector<1x128xi1>, vector<1x128xf32>
    %100 = arith.mulf %97, %99 : vector<1x128xf32>
    %c64_i32_28 = arith.constant 64 : i32
    %101 = tpu.dynamic_rotate %100 by %c64_i32_28 dim 1 : vector<1x128xf32>, i32 -> vector<1x128xf32>
    %102 = arith.addf %100, %101 : vector<1x128xf32>
    %103 = math.tanh %102 : vector<1x128xf32>
    %104 = vector.extract_strided_slice %98 {offsets = [0, 0], sizes = [1, 64], strides = [1, 1]} : vector<1x128xf32> to vector<1x64xf32>
    %cst_29 = arith.constant 5.000000e-01 : f32
    %105 = vector.broadcast %cst_29 : f32 to vector<1x64xf32>
    %106 = arith.mulf %104, %105 : vector<1x64xf32>
    %cst_30 = arith.constant 5.000000e-01 : f32
    %107 = vector.broadcast %cst_30 : f32 to vector<1x64xf32>
    %108 = arith.addf %106, %107 : vector<1x64xf32>
    %109 = vector.extract_strided_slice %103 {offsets = [0, 0], sizes = [1, 64], strides = [1, 1]} : vector<1x128xf32> to vector<1x64xf32>
    %110 = arith.mulf %108, %109 : vector<1x64xf32>
    %111 = vector.extract_strided_slice %11 {offsets = [3, 0], sizes = [1, 256], strides = [1, 1]} : vector<8x256xf32> to vector<1x256xf32>
    %112 = vector.extract_strided_slice %11 {offsets = [4, 0], sizes = [1, 256], strides = [1, 1]} : vector<8x256xf32> to vector<1x256xf32>
    %113 = arith.select %30, %111, %112 : vector<1x256xi1>, vector<1x256xf32>
    %114 = arith.truncf %110 : vector<1x64xf32> to vector<1x64xbf16>
    %cst_31 = arith.constant dense<0.000000e+00> : vector<1x256xf32>
    %115 = tpu.matmul %114, %3, %cst_31 {dimension_numbers = #tpu.dot_dimension_numbers<[1], [0], [0], [1], [0, 0, 1, 1], [], []>} : vector<1x64xbf16>, vector<64x256xbf16>, vector<1x256xf32> -> vector<1x256xf32>
    %116 = arith.addf %113, %115 : vector<1x256xf32>
    %117 = math.tanh %116 : vector<1x256xf32>
    %118 = vector.extract_strided_slice %117 {offsets = [0, 0], sizes = [1, 128], strides = [1, 1]} : vector<1x256xf32> to vector<1x128xf32>
    %cst_32 = arith.constant 5.000000e-01 : f32
    %119 = vector.broadcast %cst_32 : f32 to vector<1x128xf32>
    %120 = arith.mulf %118, %119 : vector<1x128xf32>
    %cst_33 = arith.constant 5.000000e-01 : f32
    %121 = vector.broadcast %cst_33 : f32 to vector<1x128xf32>
    %122 = arith.addf %120, %121 : vector<1x128xf32>
    %123 = vector.extract_strided_slice %117 {offsets = [0, 128], sizes = [1, 128], strides = [1, 1]} : vector<1x256xf32> to vector<1x128xf32>
    %124 = arith.select %33, %102, %123 : vector<1x128xi1>, vector<1x128xf32>
    %125 = arith.mulf %122, %124 : vector<1x128xf32>
    %c64_i32_34 = arith.constant 64 : i32
    %126 = tpu.dynamic_rotate %125 by %c64_i32_34 dim 1 : vector<1x128xf32>, i32 -> vector<1x128xf32>
    %127 = arith.addf %125, %126 : vector<1x128xf32>
    %128 = math.tanh %127 : vector<1x128xf32>
    %129 = vector.extract_strided_slice %123 {offsets = [0, 0], sizes = [1, 64], strides = [1, 1]} : vector<1x128xf32> to vector<1x64xf32>
    %cst_35 = arith.constant 5.000000e-01 : f32
    %130 = vector.broadcast %cst_35 : f32 to vector<1x64xf32>
    %131 = arith.mulf %129, %130 : vector<1x64xf32>
    %cst_36 = arith.constant 5.000000e-01 : f32
    %132 = vector.broadcast %cst_36 : f32 to vector<1x64xf32>
    %133 = arith.addf %131, %132 : vector<1x64xf32>
    %134 = vector.extract_strided_slice %128 {offsets = [0, 0], sizes = [1, 64], strides = [1, 1]} : vector<1x128xf32> to vector<1x64xf32>
    %135 = arith.mulf %133, %134 : vector<1x64xf32>
    %136 = vector.extract_strided_slice %11 {offsets = [4, 0], sizes = [1, 256], strides = [1, 1]} : vector<8x256xf32> to vector<1x256xf32>
    %137 = vector.extract_strided_slice %11 {offsets = [3, 0], sizes = [1, 256], strides = [1, 1]} : vector<8x256xf32> to vector<1x256xf32>
    %138 = arith.select %30, %136, %137 : vector<1x256xi1>, vector<1x256xf32>
    %139 = arith.truncf %135 : vector<1x64xf32> to vector<1x64xbf16>
    %cst_37 = arith.constant dense<0.000000e+00> : vector<1x256xf32>
    %140 = tpu.matmul %139, %3, %cst_37 {dimension_numbers = #tpu.dot_dimension_numbers<[1], [0], [0], [1], [0, 0, 1, 1], [], []>} : vector<1x64xbf16>, vector<64x256xbf16>, vector<1x256xf32> -> vector<1x256xf32>
    %141 = arith.addf %138, %140 : vector<1x256xf32>
    %142 = math.tanh %141 : vector<1x256xf32>
    %143 = vector.extract_strided_slice %142 {offsets = [0, 0], sizes = [1, 128], strides = [1, 1]} : vector<1x256xf32> to vector<1x128xf32>
    %cst_38 = arith.constant 5.000000e-01 : f32
    %144 = vector.broadcast %cst_38 : f32 to vector<1x128xf32>
    %145 = arith.mulf %143, %144 : vector<1x128xf32>
    %cst_39 = arith.constant 5.000000e-01 : f32
    %146 = vector.broadcast %cst_39 : f32 to vector<1x128xf32>
    %147 = arith.addf %145, %146 : vector<1x128xf32>
    %148 = vector.extract_strided_slice %142 {offsets = [0, 128], sizes = [1, 128], strides = [1, 1]} : vector<1x256xf32> to vector<1x128xf32>
    %149 = arith.select %33, %127, %148 : vector<1x128xi1>, vector<1x128xf32>
    %150 = arith.mulf %147, %149 : vector<1x128xf32>
    %c64_i32_40 = arith.constant 64 : i32
    %151 = tpu.dynamic_rotate %150 by %c64_i32_40 dim 1 : vector<1x128xf32>, i32 -> vector<1x128xf32>
    %152 = arith.addf %150, %151 : vector<1x128xf32>
    %153 = math.tanh %152 : vector<1x128xf32>
    %154 = vector.extract_strided_slice %148 {offsets = [0, 0], sizes = [1, 64], strides = [1, 1]} : vector<1x128xf32> to vector<1x64xf32>
    %cst_41 = arith.constant 5.000000e-01 : f32
    %155 = vector.broadcast %cst_41 : f32 to vector<1x64xf32>
    %156 = arith.mulf %154, %155 : vector<1x64xf32>
    %cst_42 = arith.constant 5.000000e-01 : f32
    %157 = vector.broadcast %cst_42 : f32 to vector<1x64xf32>
    %158 = arith.addf %156, %157 : vector<1x64xf32>
    %159 = vector.extract_strided_slice %153 {offsets = [0, 0], sizes = [1, 64], strides = [1, 1]} : vector<1x128xf32> to vector<1x64xf32>
    %160 = arith.mulf %158, %159 : vector<1x64xf32>
    %161 = vector.extract_strided_slice %11 {offsets = [5, 0], sizes = [1, 256], strides = [1, 1]} : vector<8x256xf32> to vector<1x256xf32>
    %162 = vector.extract_strided_slice %11 {offsets = [2, 0], sizes = [1, 256], strides = [1, 1]} : vector<8x256xf32> to vector<1x256xf32>
    %163 = arith.select %30, %161, %162 : vector<1x256xi1>, vector<1x256xf32>
    %164 = arith.truncf %160 : vector<1x64xf32> to vector<1x64xbf16>
    %cst_43 = arith.constant dense<0.000000e+00> : vector<1x256xf32>
    %165 = tpu.matmul %164, %3, %cst_43 {dimension_numbers = #tpu.dot_dimension_numbers<[1], [0], [0], [1], [0, 0, 1, 1], [], []>} : vector<1x64xbf16>, vector<64x256xbf16>, vector<1x256xf32> -> vector<1x256xf32>
    %166 = arith.addf %163, %165 : vector<1x256xf32>
    %167 = math.tanh %166 : vector<1x256xf32>
    %168 = vector.extract_strided_slice %167 {offsets = [0, 0], sizes = [1, 128], strides = [1, 1]} : vector<1x256xf32> to vector<1x128xf32>
    %cst_44 = arith.constant 5.000000e-01 : f32
    %169 = vector.broadcast %cst_44 : f32 to vector<1x128xf32>
    %170 = arith.mulf %168, %169 : vector<1x128xf32>
    %cst_45 = arith.constant 5.000000e-01 : f32
    %171 = vector.broadcast %cst_45 : f32 to vector<1x128xf32>
    %172 = arith.addf %170, %171 : vector<1x128xf32>
    %173 = vector.extract_strided_slice %167 {offsets = [0, 128], sizes = [1, 128], strides = [1, 1]} : vector<1x256xf32> to vector<1x128xf32>
    %174 = arith.select %33, %152, %173 : vector<1x128xi1>, vector<1x128xf32>
    %175 = arith.mulf %172, %174 : vector<1x128xf32>
    %c64_i32_46 = arith.constant 64 : i32
    %176 = tpu.dynamic_rotate %175 by %c64_i32_46 dim 1 : vector<1x128xf32>, i32 -> vector<1x128xf32>
    %177 = arith.addf %175, %176 : vector<1x128xf32>
    %178 = math.tanh %177 : vector<1x128xf32>
    %179 = vector.extract_strided_slice %173 {offsets = [0, 0], sizes = [1, 64], strides = [1, 1]} : vector<1x128xf32> to vector<1x64xf32>
    %cst_47 = arith.constant 5.000000e-01 : f32
    %180 = vector.broadcast %cst_47 : f32 to vector<1x64xf32>
    %181 = arith.mulf %179, %180 : vector<1x64xf32>
    %cst_48 = arith.constant 5.000000e-01 : f32
    %182 = vector.broadcast %cst_48 : f32 to vector<1x64xf32>
    %183 = arith.addf %181, %182 : vector<1x64xf32>
    %184 = vector.extract_strided_slice %178 {offsets = [0, 0], sizes = [1, 64], strides = [1, 1]} : vector<1x128xf32> to vector<1x64xf32>
    %185 = arith.mulf %183, %184 : vector<1x64xf32>
    %186 = vector.extract_strided_slice %11 {offsets = [6, 0], sizes = [1, 256], strides = [1, 1]} : vector<8x256xf32> to vector<1x256xf32>
    %187 = vector.extract_strided_slice %11 {offsets = [1, 0], sizes = [1, 256], strides = [1, 1]} : vector<8x256xf32> to vector<1x256xf32>
    %188 = arith.select %30, %186, %187 : vector<1x256xi1>, vector<1x256xf32>
    %189 = arith.truncf %185 : vector<1x64xf32> to vector<1x64xbf16>
    %cst_49 = arith.constant dense<0.000000e+00> : vector<1x256xf32>
    %190 = tpu.matmul %189, %3, %cst_49 {dimension_numbers = #tpu.dot_dimension_numbers<[1], [0], [0], [1], [0, 0, 1, 1], [], []>} : vector<1x64xbf16>, vector<64x256xbf16>, vector<1x256xf32> -> vector<1x256xf32>
    %191 = arith.addf %188, %190 : vector<1x256xf32>
    %192 = math.tanh %191 : vector<1x256xf32>
    %193 = vector.extract_strided_slice %192 {offsets = [0, 0], sizes = [1, 128], strides = [1, 1]} : vector<1x256xf32> to vector<1x128xf32>
    %cst_50 = arith.constant 5.000000e-01 : f32
    %194 = vector.broadcast %cst_50 : f32 to vector<1x128xf32>
    %195 = arith.mulf %193, %194 : vector<1x128xf32>
    %cst_51 = arith.constant 5.000000e-01 : f32
    %196 = vector.broadcast %cst_51 : f32 to vector<1x128xf32>
    %197 = arith.addf %195, %196 : vector<1x128xf32>
    %198 = vector.extract_strided_slice %192 {offsets = [0, 128], sizes = [1, 128], strides = [1, 1]} : vector<1x256xf32> to vector<1x128xf32>
    %199 = arith.select %33, %177, %198 : vector<1x128xi1>, vector<1x128xf32>
    %200 = arith.mulf %197, %199 : vector<1x128xf32>
    %c64_i32_52 = arith.constant 64 : i32
    %201 = tpu.dynamic_rotate %200 by %c64_i32_52 dim 1 : vector<1x128xf32>, i32 -> vector<1x128xf32>
    %202 = arith.addf %200, %201 : vector<1x128xf32>
    %203 = math.tanh %202 : vector<1x128xf32>
    %204 = vector.extract_strided_slice %198 {offsets = [0, 0], sizes = [1, 64], strides = [1, 1]} : vector<1x128xf32> to vector<1x64xf32>
    %cst_53 = arith.constant 5.000000e-01 : f32
    %205 = vector.broadcast %cst_53 : f32 to vector<1x64xf32>
    %206 = arith.mulf %204, %205 : vector<1x64xf32>
    %cst_54 = arith.constant 5.000000e-01 : f32
    %207 = vector.broadcast %cst_54 : f32 to vector<1x64xf32>
    %208 = arith.addf %206, %207 : vector<1x64xf32>
    %209 = vector.extract_strided_slice %203 {offsets = [0, 0], sizes = [1, 64], strides = [1, 1]} : vector<1x128xf32> to vector<1x64xf32>
    %210 = arith.mulf %208, %209 : vector<1x64xf32>
    %211 = vector.extract_strided_slice %11 {offsets = [7, 0], sizes = [1, 256], strides = [1, 1]} : vector<8x256xf32> to vector<1x256xf32>
    %212 = vector.extract_strided_slice %11 {offsets = [0, 0], sizes = [1, 256], strides = [1, 1]} : vector<8x256xf32> to vector<1x256xf32>
    %213 = arith.select %30, %211, %212 : vector<1x256xi1>, vector<1x256xf32>
    %214 = arith.truncf %210 : vector<1x64xf32> to vector<1x64xbf16>
    %cst_55 = arith.constant dense<0.000000e+00> : vector<1x256xf32>
    %215 = tpu.matmul %214, %3, %cst_55 {dimension_numbers = #tpu.dot_dimension_numbers<[1], [0], [0], [1], [0, 0, 1, 1], [], []>} : vector<1x64xbf16>, vector<64x256xbf16>, vector<1x256xf32> -> vector<1x256xf32>
    %216 = arith.addf %213, %215 : vector<1x256xf32>
    %217 = math.tanh %216 : vector<1x256xf32>
    %218 = vector.extract_strided_slice %217 {offsets = [0, 0], sizes = [1, 128], strides = [1, 1]} : vector<1x256xf32> to vector<1x128xf32>
    %cst_56 = arith.constant 5.000000e-01 : f32
    %219 = vector.broadcast %cst_56 : f32 to vector<1x128xf32>
    %220 = arith.mulf %218, %219 : vector<1x128xf32>
    %cst_57 = arith.constant 5.000000e-01 : f32
    %221 = vector.broadcast %cst_57 : f32 to vector<1x128xf32>
    %222 = arith.addf %220, %221 : vector<1x128xf32>
    %223 = vector.extract_strided_slice %217 {offsets = [0, 128], sizes = [1, 128], strides = [1, 1]} : vector<1x256xf32> to vector<1x128xf32>
    %224 = arith.select %33, %202, %223 : vector<1x128xi1>, vector<1x128xf32>
    %225 = arith.mulf %222, %224 : vector<1x128xf32>
    %c64_i32_58 = arith.constant 64 : i32
    %226 = tpu.dynamic_rotate %225 by %c64_i32_58 dim 1 : vector<1x128xf32>, i32 -> vector<1x128xf32>
    %227 = arith.addf %225, %226 : vector<1x128xf32>
    %228 = math.tanh %227 : vector<1x128xf32>
    %229 = vector.extract_strided_slice %223 {offsets = [0, 0], sizes = [1, 64], strides = [1, 1]} : vector<1x128xf32> to vector<1x64xf32>
    %cst_59 = arith.constant 5.000000e-01 : f32
    %230 = vector.broadcast %cst_59 : f32 to vector<1x64xf32>
    %231 = arith.mulf %229, %230 : vector<1x64xf32>
    %cst_60 = arith.constant 5.000000e-01 : f32
    %232 = vector.broadcast %cst_60 : f32 to vector<1x64xf32>
    %233 = arith.addf %231, %232 : vector<1x64xf32>
    %234 = vector.extract_strided_slice %228 {offsets = [0, 0], sizes = [1, 64], strides = [1, 1]} : vector<1x128xf32> to vector<1x64xf32>
    %235 = arith.mulf %233, %234 : vector<1x64xf32>
    %cst_61 = arith.constant dense<0.000000e+00> : vector<1x256xf32>
    %236 = tpu.matmul %235, %5, %cst_61 {dimension_numbers = #tpu.dot_dimension_numbers<[1], [0], [0], [1], [0, 0, 1, 1], [], []>} : vector<1x64xf32>, vector<64x256xf32>, vector<1x256xf32> -> vector<1x256xf32>
    %237 = arith.addf %236, %6 : vector<1x256xf32>
    %c0_62 = arith.constant 0 : index
    %c0_63 = arith.constant 0 : index
    %238 = vector.load %arg2[%c0_62, %c0_63] : memref<1x256xf32, #tpu.memory_space<vmem>>, vector<1x256xf32>
    tpu.vector_store %arg2[%c0_62, %c0_63], %237 {strides = array<i32>} : memref<1x256xf32, #tpu.memory_space<vmem>>, vector<1x256xf32>,
    return
  }
}

</mosaic_0001>

<bundles_post_ra>
// kernel: type_model_forward.1
= control target key start
LH: loop header
LB: loop body
LE: loop exit
PB: predicated region body
PF: predicated region fallthrough
CT: control target
= control target key end

     0   :  { %7 = vsyncpa [#allocation3], 0  ;;  %s1325_s0 = inlined_call_operand.hbm [shape: f32[8,16], index: 0, kind: input, shape index: {}]   ;;  %s1326_s1 = inlined_call_operand.hbm [shape: f32[160,256], index: 1, kind: input, shape index: {}]   ;;  %s1327_s2 = inlined_call_operand.vmem [shape: f32[1,256], index: 2, kind: output, shape index: {}]  }
   0x1   :  { %8 = vsyncpa [#allocation5], 0  ;;  %s1069_s9 = smov [#allocation2]   ;;  %s1070_s11 = smov [#allocation4]  }
   0x2   :  { %s15_s10 = sshll.u32 %s1069_s9, 4  ;;  %s24_s12 = sshll.u32 %s1070_s11, 4  ;;  %s16_s10 = int_to_ptr.vmem [resolvable:$true] %s15_s10  ;;  %s1092_s12 = int_to_ptr.vmem [resolvable:$true] %s24_s12 }
   0x3   :  { %s1021_s15 = scalar_lea.hbm %s1325_s0, 128 }
   0x4   :  { %p1022_p0 = scmp.ne.s32.totalorder %s1325_s0, %s1021_s15  ;;  %p1025_p1 = scmp.lt.u32.totalorder %s1021_s15, %s1325_s0 }
   0x6   :  { %p1027_p2 = pnand %p1025_p1, %p1022_p0 }
   0x8   :  { %1030 = shalt.err (!%p1027_p2)
}
   0x9   :  { %s1031_s20 = scalar_lea.vmem %s16_s10, 128  ;;  %p1036_p4 = scmp.lt.s32.totalorder %s16_s10, %s16_s10 }
   0xa   :  { %p1032_p3 = scmp.ne.s32.totalorder %s16_s10, %s1031_s20  ;;  %p1037_p5 = scmp.lt.s32.totalorder %s1031_s20, %s1031_s20 }
   0xc   :  { %p1038_p6 = por %p1037_p5, %p1036_p4 }
   0xe   :  { %p1039_p7 = pnand %p1038_p6, %p1032_p3 }
  0x10   :  { %1042 = shalt.err (!%p1039_p7)
}
  0x11   :  { %18 = dma.hbm_to_vmem [thread:$0]  %s1325_s0, 128, %s16_s10, [#allocation3]  }
  0x12   :  { %s1043_s25 = scalar_lea.hbm %s1326_s1, 5120 }
  0x13   :  { %p1044_p8 = scmp.ne.s32.totalorder %s1326_s1, %s1043_s25  ;;  %p1047_p9 = scmp.lt.u32.totalorder %s1043_s25, %s1326_s1 }
  0x15   :  { %p1049_p10 = pnand %p1047_p9, %p1044_p8 }
  0x17   :  { %1052 = shalt.err (!%p1049_p10)
}
  0x18   :  { %s1053_s30 = scalar_lea.vmem %s1092_s12, 5120  ;;  %p1058_p12 = scmp.lt.s32.totalorder %s1092_s12, %s1092_s12 }
  0x19   :  { %p1054_p11 = scmp.ne.s32.totalorder %s1092_s12, %s1053_s30  ;;  %p1059_p13 = scmp.lt.s32.totalorder %s1053_s30, %s1053_s30 }
  0x1b   :  { %p1060_p0 = por %p1059_p13, %p1058_p12 }
  0x1d   :  { %p1061_p1 = pnand %p1060_p0, %p1054_p11 }
  0x1f   :  { %1064 = shalt.err (!%p1061_p1)
}
  0x20   :  { %s1071_s0 = smov 256   ;;  %s1072_s3 = smov 16  }
  0x21   :  { %30 = dma.hbm_to_vmem [thread:$0]  %s1326_s1, 5120, %s1092_s12, [#allocation5], %s1071_s0, %s1071_s0, %s1072_s3  }
  0x22   :  { %1065 = dma.done.wait [#allocation3], 128  }
  0x23   :  { %1066 = vsyncadd [#allocation3], 4294967168 }
  0x24   :  { %1067 = dma.done.wait [#allocation5], 5120  }
  0x25   :  { %1068 = vsyncadd [#allocation5], 4294962176  ;;  %v1073_v0 = vmov 0   ;;  %v45_v1 = vld [vmem:[#allocation4 + $0x28] sm:$0xff]  ;;  %v47_v2 = vld [vmem:[#allocation4 + $0x38] sm:$0xff]  ;;  %vm101_vm0 = vcmask 130048   ;;  %v91_v33 = vlaneseq }
  0x26   :  { %137 = vmatprep.mubr.bf16.mxu0 %v1073_v0  ;;  %220 = vmatprep.mubr.bf16.mxu1 %v1073_v0  ;;  %v44_v3 = vld [vmem:[#allocation4 + $0x20] sm:$0xff]  ;;  %v1125_v4 = vpack.c.bf16 %v47_v2, %v45_v1  ;;  %v46_v5 = vld [vmem:[#allocation4 + $0x30] sm:$0xff]  ;;  %v39_v6 = vld [vmem:[#allocation4 + $0x8] sm:$0xff]  ;;  %s1074_s1 = smov 64   ;;  %vm184_vm4 = vcmask 523264  }
  0x27   :  { %v41_v7 = vld [vmem:[#allocation4 + $0x18] sm:$0xff]  ;;  %v1127_v8 = vpack.c.bf16 %v46_v5, %v44_v3  ;;  %v49_v10 = vld [vmem:[#allocation4 + $0x48] sm:$0xff]  ;;  %v38_v12 = vld [vmem:[#allocation4] sm:$0xff]  ;;  %v1171_v34 = vshrl.u32 %v91_v33, 7  ;;  %v1174_v35 = vand.u32 127, %v91_v33  ;;  %vm931_vm5 = vcmp.lt.s32.totalorder %v91_v33, 256 }
  0x28   :  { %v43_v9 = vpack.c.bf16 %v41_v7, %v39_v6  ;;  %v51_v11 = vld [vmem:[#allocation4 + $0x58] sm:$0xff]  ;;  %188 = vmatprep.subr.bf16.mxu1 %v1125_v4  ;;  %v40_v14 = vld [vmem:[#allocation4 + $0x10] sm:$0xff]  ;;  %v48_v15 = vld [vmem:[#allocation4 + $0x40] sm:$0xff] }
  0x29   :  { %v1130_v13 = vpack.c.bf16 %v51_v11, %v49_v10  ;;  %v50_v16 = vld [vmem:[#allocation4 + $0x50] sm:$0xff]  ;;  %189 = vmatpush1.bf16.msra.mxu1 %v1127_v8  ;;  %v42_v17 = vpack.c.bf16 %v40_v14, %v38_v12  ;;  %v88_v19 = vld [vmem:[#allocation2] sm:$0xff]  ;;  %v53_v20 = vld [vmem:[#allocation4 + $0x68] sm:$0xff]  ;;  %v93_v36 = vsub.s32 0, %v1171_v34  ;;  %v97_v38 = vsub.s32 1, %v1171_v34 }
  0x2a   :  { %105 = vmatprep.subr.bf16.mxu0 %v43_v9  ;;  %v1133_v18 = vpack.c.bf16 %v50_v16, %v48_v15  ;;  %v55_v21 = vld [vmem:[#allocation4 + $0x78] sm:$0xff]  ;;  %v89_v22 = vpack.c.bf16 %v88_v19, %v88_v19  ;;  %v52_v24 = vld [vmem:[#allocation4 + $0x60] sm:$0xff]  ;;  %v54_v25 = vld [vmem:[#allocation4 + $0x70] sm:$0xff]  ;;  %v148_v39 = vadd.s32 128, %v1174_v35  ;;  %v153_v42 = vand.u32 63, %v1174_v35 }
  0x2b   :  { %190 = vmatprep.subr.bf16.mxu1 %v1130_v13  ;;  %v1136_v23 = vpack.c.bf16 %v55_v21, %v53_v20  ;;  %106 = vmatpush1.bf16.msra.mxu0 %v42_v17  ;;  %v57_v26 = vld [vmem:[#allocation4 + $0x88] sm:$0xff]  ;;  %v59_v27 = vld [vmem:[#allocation4 + $0x98] sm:$0xff]  ;;  %v1140_v28 = vpack.c.bf16 %v54_v25, %v52_v24  ;;  %v56_v30 = vld [vmem:[#allocation4 + $0x80] sm:$0xff]  ;;  %vm175_vm3 = vcmp.lt.s32.totalorder %v1174_v35, 64 }
  0x2c   :  { %254 = vmatprep.subr.bf16.mxu0 %v1125_v4  ;;  %v1143_v29 = vpack.c.bf16 %v59_v27, %v57_v26  ;;  %v58_v31 = vld [vmem:[#allocation4 + $0x90] sm:$0xff]  ;;  %v69_v37 = vld [vmem:[#allocation4 + $0xa0] ss:$8 sm:$0x3]  ;;  %v160_v43 = vand.u32 63, %v148_v39  ;;  %vm1184_vm1 = vcmp.lt.s32.totalorder %v153_v42, 32 }
  0x2d   :  { %191 = vmatpush1.bf16.msra.mxu1 %v1133_v18  ;;  %v1149_v32 = vpack.c.bf16 %v58_v31, %v56_v30  ;;  %v94_v40 = vrot.slane %v69_v37, %v93_v36  ;;  %v98_v41 = vrot.slane %v69_v37, %v97_v38 }
  0x2e   :  { %940 = vmatmul.mubr.msk.bf16.vlgmr.msra.gmra.mrb[0].mxu0 %vm101_vm0, %v89_v22  ;;  %192 = vmatprep.subr.bf16.mxu1 %v1136_v23  ;;  %vm1188_vm2 = vcmp.lt.s32.totalorder %v160_v43, 32 }
  0x2f   :  { %255 = vmatpush1.bf16.msra.mxu0 %v1127_v8  ;;  %286 = vmatprep.mubr.bf16.mxu0 %v1073_v0 }
  0x30   :  { %256 = vmatprep.subr.bf16.mxu0 %v1130_v13 }
  0x31   :  { %193 = vmatpush1.bf16.msra.mxu1 %v1140_v28 }
  0x32   :  { %194 = vmatprep.subr.bf16.mxu1 %v1143_v29 }
  0x33   :  { %257 = vmatpush1.bf16.msra.mxu0 %v1133_v18 }
  0x34   :  { %258 = vmatprep.subr.bf16.mxu0 %v1136_v23 }
  0x35   :  { %195 = vmatpush1.bf16.msra.mxu1 %v1149_v32 }
  0x36   :  { %341 = vmatprep.subr.bf16.mxu1 %v1125_v4 }
  0x37   :  { %259 = vmatpush1.bf16.msra.mxu0 %v1140_v28 }
  0x38   :  { %221 = vmatmul.mubr.bf16.vlgmr.msra.gmra.mrb[0].mxu1 %v1073_v0  ;;  %260 = vmatprep.subr.bf16.mxu0 %v1143_v29 }
  0x39   :  { %342 = vmatpush1.bf16.msra.mxu1 %v1127_v8  ;;  %373 = vmatprep.mubr.bf16.mxu1 %v1073_v0 }
  0x3a   :  { %343 = vmatprep.subr.bf16.mxu1 %v1130_v13 }
  0x3b   :  { %261 = vmatpush1.bf16.msra.mxu0 %v1149_v32 }
  0x3c   :  { %427 = vmatprep.subr.bf16.mxu0 %v1125_v4 }
  0x3d   :  { %344 = vmatpush1.bf16.msra.mxu1 %v1133_v18 }
  0x3e   :  { %345 = vmatprep.subr.bf16.mxu1 %v1136_v23 }
  0x41   :  { %346 = vmatpush1.bf16.msra.mxu1 %v1140_v28 }
  0x42   :  { %347 = vmatprep.subr.bf16.mxu1 %v1143_v29 }
  0x45   :  { %348 = vmatpush1.bf16.msra.mxu1 %v1149_v32 }
  0x46   :  { %509 = vmatprep.subr.bf16.mxu1 %v1125_v4 }
 0x101   :  { %v139_v44 = vpop.f32.mrb[0].mxu0 }
 0x102   :  { %v140_v45 = vadd.f32 %v139_v44, %v94_v40  ;;  %v141_v46 = vpop.f32.mrb[1].mxu0 }
 0x103   :  { %v142_v47 = vadd.f32 %v141_v46, %v98_v41  ;;  %v143_v48 = vpop.f32.mrb[2].mxu0 }
 0x104   :  { %v144_v50 = vpop.f32.mrb[3].mxu0  ;;  %v244_v52 = vrot.slane %v140_v45, 5  ;;  %v328_v53 = vrot.slane %v140_v45, 3  ;;  %v415_v54 = vrot.slane %v140_v45, 1  ;;  %v178_v61 = vrot.slane %v140_v45, 7 }
 0x105   :  { %v245_v55 = vrot.slane %v142_v47, 5  ;;  %v329_v56 = vrot.slane %v142_v47, 3  ;;  %v416_v57 = vrot.slane %v142_v47, 1  ;;  %v179_v2 = vrot.slane %v142_v47, 7 }
 0x106   :  { %v1194_v58 = vsel %vm1184_vm1, %v140_v45, %v244_v52  ;;  %v1198_v59 = vsel %vm1184_vm1, %v140_v45, %v328_v53  ;;  %v1202_v60 = vsel %vm1184_vm1, %v140_v45, %v415_v54  ;;  %v1218_v3 = vsel %vm1184_vm1, %v140_v45, %v178_v61 }
 0x107   :  { %v1206_v62 = vsel %vm1188_vm2, %v142_v47, %v245_v55  ;;  %v1210_v63 = vsel %vm1188_vm2, %v142_v47, %v329_v56  ;;  %v1214_v1 = vsel %vm1188_vm2, %v142_v47, %v416_v57  ;;  %v1223_v7 = vsel %vm1188_vm2, %v142_v47, %v179_v2 }
 0x10b   :  { %v222_v5 = vpop.f32.mrb[0].mxu1 }
 0x10c   :  { %v229_v6 = vadd.f32 %v222_v5, %v1218_v3  ;;  %v224_v9 = vpop.f32.mrb[1].mxu1 }
 0x10d   :  { %v230_v10 = vadd.f32 %v224_v9, %v1223_v7  ;;  %v226_v11 = vpop.f32.mrb[2].mxu1 }
 0x10e   :  { %973 = vtanh.f32 %v229_v6  ;;  %v227_v12 = vpop.f32.mrb[3].mxu1 }
 0x10f   :  { %975 = vtanh.f32 %v230_v10 }
 0x118   :  { %v974_v14 = vpop.eup %973 }
 0x119   :  { %v976_v15 = vpop.eup %975  ;;  %v233_v16 = vmul.f32 0.5, %v974_v14 }
 0x11a   :  { %v235_v19 = vsel %vm175_vm3, 0.0, %v976_v15  ;;  %v241_v24 = vmul.f32 0.5, %v976_v15 }
 0x11b   :  { %v234_v17 = vadd.f32 0.5, %v233_v16 }
 0x11c   :  { %v242_v25 = vadd.f32 0.5, %v241_v24 }
 0x11d   :  { %v236_v20 = vmul.f32 %v235_v19, %v234_v17 }
 0x11f   :  { %237 = vrot.lane.b32.xlu0 %v236_v20, %s1074_s1 }
 0x191   :  { %v238_v21 = vpop.permute.xlu0 %237 }
 0x192   :  { %v239_v22 = vadd.f32 %v238_v21, %v236_v20 }
 0x194   :  { %977 = vtanh.f32 %v239_v22 }
 0x19e   :  { %v978_v26 = vpop.eup %977 }
 0x19f   :  { %v243_v27 = vmul.f32 %v978_v26, %v242_v25 }
 0x1a1   :  { %v250_v30 = vpack.c.bf16 %v243_v27, %v243_v27 }
 0x1a3   :  { %941 = vmatmul.mubr.msk.bf16.vlgmr.msra.gmra.mrb[4].mxu0 %vm184_vm4, %v250_v30 }
 0x1a4   :  { %428 = vmatpush1.bf16.msra.mxu0 %v1127_v8  ;;  %459 = vmatprep.mubr.bf16.mxu0 %v1073_v0 }
 0x1a5   :  { %429 = vmatprep.subr.bf16.mxu0 %v1130_v13 }
 0x1a8   :  { %430 = vmatpush1.bf16.msra.mxu0 %v1133_v18 }
 0x1a9   :  { %431 = vmatprep.subr.bf16.mxu0 %v1136_v23 }
 0x1ac   :  { %432 = vmatpush1.bf16.msra.mxu0 %v1140_v28 }
 0x1ad   :  { %433 = vmatprep.subr.bf16.mxu0 %v1143_v29 }
 0x1b0   :  { %434 = vmatpush1.bf16.msra.mxu0 %v1149_v32 }
 0x1b1   :  { %589 = vmatprep.subr.bf16.mxu0 %v1125_v4 }
 0x276   :  { %v288_v31 = vpop.f32.mrb[4].mxu0 }
 0x277   :  { %v297_v37 = vrot.slane %v288_v31, 7  ;;  %v290_v39 = vpop.f32.mrb[5].mxu0 }
 0x278   :  { %v298_v40 = vrot.slane %v290_v39, 7  ;;  %v292_v41 = vpop.f32.mrb[6].mxu0 }
 0x279   :  { %v301_v42 = vadd.f32 %v297_v37, %v1194_v58  ;;  %v293_v43 = vpop.f32.mrb[7].mxu0 }
 0x27a   :  { %v302_v44 = vadd.f32 %v298_v40, %v1206_v62 }
 0x27b   :  { %979 = vtanh.f32 %v301_v42 }
 0x27c   :  { %981 = vtanh.f32 %v302_v44 }
 0x285   :  { %v980_v45 = vpop.eup %979 }
 0x286   :  { %v982_v46 = vpop.eup %981  ;;  %v305_v47 = vmul.f32 0.5, %v980_v45 }
 0x287   :  { %v308_v48 = vrot.slane %v982_v46, 1  ;;  %v325_v57 = vmul.f32 0.5, %v982_v46 }
 0x288   :  { %v306_v50 = vadd.f32 0.5, %v305_v47 }
 0x289   :  { %v310_v49 = vsel %vm175_vm3, %v239_v22, %v308_v48  ;;  %v326_v61 = vadd.f32 0.5, %v325_v57 }
 0x28a   :  { %v312_v51 = vrot.slane %v310_v49, 7 }
 0x28c   :  { %v314_v52 = vmul.f32 %v312_v51, %v306_v50 }
 0x28e   :  { %v316_v53 = vrot.slane %v314_v52, 1 }
 0x290   :  { %318 = vrot.lane.b32.xlu0 %v316_v53, %s1074_s1 }
 0x302   :  { %v319_v54 = vpop.permute.xlu0 %318 }
 0x303   :  { %v321_v55 = vrot.slane %v319_v54, 7 }
 0x305   :  { %v323_v56 = vadd.f32 %v321_v55, %v314_v52 }
 0x307   :  { %983 = vtanh.f32 %v323_v56 }
 0x311   :  { %v984_v2 = vpop.eup %983 }
 0x312   :  { %v327_v5 = vmul.f32 %v984_v2, %v326_v61 }
 0x314   :  { %v334_v6 = vpack.c.bf16 %v327_v5, %v327_v5 }
 0x316   :  { %v336_v9 = vshrl.u32 %v334_v6, 16 }
 0x318   :  { %942 = vmatmul.mubr.msk.bf16.vlgmr.msra.gmra.mrb[4].mxu1 %vm184_vm4, %v336_v9 }
 0x319   :  { %510 = vmatpush1.bf16.msra.mxu1 %v1127_v8  ;;  %541 = vmatprep.mubr.bf16.mxu1 %v1073_v0 }
 0x31a   :  { %511 = vmatprep.subr.bf16.mxu1 %v1130_v13 }
 0x31d   :  { %512 = vmatpush1.bf16.msra.mxu1 %v1133_v18 }
 0x31e   :  { %513 = vmatprep.subr.bf16.mxu1 %v1136_v23 }
 0x321   :  { %514 = vmatpush1.bf16.msra.mxu1 %v1140_v28 }
 0x322   :  { %515 = vmatprep.subr.bf16.mxu1 %v1143_v29 }
 0x325   :  { %516 = vmatpush1.bf16.msra.mxu1 %v1149_v32 }
 0x326   :  { %671 = vmatprep.subr.bf16.mxu1 %v1125_v4 }
 0x3eb   :  { %v375_v10 = vpop.f32.mrb[4].mxu1 }
 0x3ec   :  { %v384_v11 = vrot.slane %v375_v10, 6  ;;  %v377_v12 = vpop.f32.mrb[5].mxu1 }
 0x3ed   :  { %v385_v14 = vrot.slane %v377_v12, 6  ;;  %v379_v15 = vpop.f32.mrb[6].mxu1 }
 0x3ee   :  { %v388_v16 = vadd.f32 %v384_v11, %v1198_v59  ;;  %v380_v17 = vpop.f32.mrb[7].mxu1 }
 0x3ef   :  { %v389_v19 = vadd.f32 %v385_v14, %v1210_v63 }
 0x3f0   :  { %985 = vtanh.f32 %v388_v16 }
 0x3f1   :  { %987 = vtanh.f32 %v389_v19 }
 0x3fa   :  { %v986_v20 = vpop.eup %985 }
 0x3fb   :  { %v988_v21 = vpop.eup %987  ;;  %v392_v22 = vmul.f32 0.5, %v986_v20 }
 0x3fc   :  { %v395_v24 = vrot.slane %v988_v21, 1  ;;  %v412_v41 = vmul.f32 0.5, %v988_v21 }
 0x3fd   :  { %v393_v26 = vadd.f32 0.5, %v392_v22 }
 0x3fe   :  { %v397_v25 = vsel %vm175_vm3, %v323_v56, %v395_v24  ;;  %v413_v42 = vadd.f32 0.5, %v412_v41 }
 0x3ff   :  { %v399_v27 = vrot.slane %v397_v25, 7 }
 0x401   :  { %v401_v30 = vmul.f32 %v399_v27, %v393_v26 }
 0x403   :  { %v403_v31 = vrot.slane %v401_v30, 2 }
 0x405   :  { %405 = vrot.lane.b32.xlu1 %v403_v31, %s1074_s1 }
 0x477   :  { %v406_v37 = vpop.permute.xlu1 %405 }
 0x478   :  { %v408_v39 = vrot.slane %v406_v37, 6 }
 0x47a   :  { %v410_v40 = vadd.f32 %v408_v39, %v401_v30 }
 0x47c   :  { %989 = vtanh.f32 %v410_v40 }
 0x486   :  { %v990_v43 = vpop.eup %989 }
 0x487   :  { %v414_v44 = vmul.f32 %v990_v43, %v413_v42 }
 0x489   :  { %v421_v45 = vpack.c.bf16 %v414_v44, %v414_v44 }
 0x48b   :  { %v423_v46 = vrot.slane %v421_v45, 1 }
 0x48d   :  { %943 = vmatmul.mubr.msk.bf16.vlgmr.msra.gmra.mrb[8].mxu0 %vm184_vm4, %v423_v46 }
 0x48e   :  { %590 = vmatpush1.bf16.msra.mxu0 %v1127_v8  ;;  %621 = vmatprep.mubr.bf16.mxu0 %v1073_v0 }
 0x48f   :  { %591 = vmatprep.subr.bf16.mxu0 %v1130_v13 }
 0x492   :  { %592 = vmatpush1.bf16.msra.mxu0 %v1133_v18 }
 0x493   :  { %593 = vmatprep.subr.bf16.mxu0 %v1136_v23 }
 0x496   :  { %594 = vmatpush1.bf16.msra.mxu0 %v1140_v28 }
 0x497   :  { %595 = vmatprep.subr.bf16.mxu0 %v1143_v29 }
 0x49a   :  { %596 = vmatpush1.bf16.msra.mxu0 %v1149_v32 }
 0x49b   :  { %751 = vmatprep.subr.bf16.mxu0 %v1125_v4 }
 0x560   :  { %v461_v47 = vpop.f32.mrb[8].mxu0 }
 0x561   :  { %v470_v48 = vrot.slane %v461_v47, 5  ;;  %v463_v49 = vpop.f32.mrb[9].mxu0 }
 0x562   :  { %v471_v50 = vrot.slane %v463_v49, 5  ;;  %v465_v51 = vpop.f32.mrb[10].mxu0 }
 0x563   :  { %v474_v52 = vadd.f32 %v470_v48, %v1202_v60  ;;  %v466_v53 = vpop.f32.mrb[11].mxu0 }
 0x564   :  { %v475_v54 = vadd.f32 %v471_v50, %v1214_v1 }
 0x565   :  { %991 = vtanh.f32 %v474_v52 }
 0x566   :  { %993 = vtanh.f32 %v475_v54 }
 0x56f   :  { %v992_v55 = vpop.eup %991 }
 0x570   :  { %v994_v56 = vpop.eup %993  ;;  %v478_v57 = vmul.f32 0.5, %v992_v55 }
 0x571   :  { %v481_v61 = vrot.slane %v994_v56, 1  ;;  %v498_v14 = vmul.f32 0.5, %v994_v56 }
 0x572   :  { %v479_v4 = vadd.f32 0.5, %v478_v57 }
 0x573   :  { %v483_v2 = vsel %vm175_vm3, %v410_v40, %v481_v61  ;;  %v499_v15 = vadd.f32 0.5, %v498_v14 }
 0x574   :  { %v485_v5 = vrot.slane %v483_v2, 7 }
 0x576   :  { %v487_v6 = vmul.f32 %v485_v5, %v479_v4 }
 0x578   :  { %v489_v9 = vrot.slane %v487_v6, 3 }
 0x57a   :  { %491 = vrot.lane.b32.xlu1 %v489_v9, %s1074_s1 }
 0x5ec   :  { %v492_v10 = vpop.permute.xlu1 %491 }
 0x5ed   :  { %v494_v11 = vrot.slane %v492_v10, 5 }
 0x5ef   :  { %v496_v12 = vadd.f32 %v494_v11, %v487_v6 }
 0x5f1   :  { %995 = vtanh.f32 %v496_v12 }
 0x5fb   :  { %v996_v16 = vpop.eup %995 }
 0x5fc   :  { %v500_v17 = vmul.f32 %v996_v16, %v499_v15 }
 0x5fe   :  { %v501_v19 = vpack.c.bf16 %v500_v17, %v500_v17 }
 0x600   :  { %v503_v20 = vshrl.u32 %v501_v19, 16 }
 0x602   :  { %v505_v21 = vrot.slane %v503_v20, 1 }
 0x604   :  { %944 = vmatmul.mubr.msk.bf16.vlgmr.msra.gmra.mrb[8].mxu1 %vm184_vm4, %v505_v21 }
 0x605   :  { %672 = vmatpush1.bf16.msra.mxu1 %v1127_v8  ;;  %703 = vmatprep.mubr.bf16.mxu1 %v1073_v0 }
 0x606   :  { %673 = vmatprep.subr.bf16.mxu1 %v1130_v13 }
 0x609   :  { %674 = vmatpush1.bf16.msra.mxu1 %v1133_v18 }
 0x60a   :  { %675 = vmatprep.subr.bf16.mxu1 %v1136_v23 }
 0x60d   :  { %676 = vmatpush1.bf16.msra.mxu1 %v1140_v28 }
 0x60e   :  { %677 = vmatprep.subr.bf16.mxu1 %v1143_v29 }
 0x611   :  { %678 = vmatpush1.bf16.msra.mxu1 %v1149_v32 }
 0x6d7   :  { %v543_v22 = vpop.f32.mrb[8].mxu1 }
 0x6d8   :  { %v552_v24 = vrot.slane %v543_v22, 4  ;;  %v545_v25 = vpop.f32.mrb[9].mxu1 }
 0x6d9   :  { %v553_v26 = vrot.slane %v545_v25, 4  ;;  %v547_v27 = vpop.f32.mrb[10].mxu1 }
 0x6da   :  { %v556_v30 = vadd.f32 %v552_v24, %v1218_v3  ;;  %v548_v31 = vpop.f32.mrb[11].mxu1 }
 0x6db   :  { %v557_v37 = vadd.f32 %v553_v26, %v1223_v7 }
 0x6dc   :  { %997 = vtanh.f32 %v556_v30 }
 0x6dd   :  { %999 = vtanh.f32 %v557_v37 }
 0x6e6   :  { %v998_v39 = vpop.eup %997 }
 0x6e7   :  { %v1000_v40 = vpop.eup %999  ;;  %v560_v41 = vmul.f32 0.5, %v998_v39 }
 0x6e8   :  { %v563_v42 = vrot.slane %v1000_v40, 1  ;;  %v580_v7 = vmul.f32 0.5, %v1000_v40 }
 0x6e9   :  { %v561_v44 = vadd.f32 0.5, %v560_v41 }
 0x6ea   :  { %v565_v43 = vsel %vm175_vm3, %v496_v12, %v563_v42  ;;  %v581_v50 = vadd.f32 0.5, %v580_v7 }
 0x6eb   :  { %v567_v45 = vrot.slane %v565_v43, 7 }
 0x6ed   :  { %v569_v46 = vmul.f32 %v567_v45, %v561_v44 }
 0x6ef   :  { %v571_v47 = vrot.slane %v569_v46, 4 }
 0x6f1   :  { %573 = vrot.lane.b32.xlu0 %v571_v47, %s1074_s1 }
 0x763   :  { %v574_v48 = vpop.permute.xlu0 %573 }
 0x764   :  { %v576_v3 = vrot.slane %v574_v48, 4 }
 0x766   :  { %v578_v49 = vadd.f32 %v576_v3, %v569_v46 }
 0x768   :  { %1001 = vtanh.f32 %v578_v49 }
 0x772   :  { %v1002_v51 = vpop.eup %1001 }
 0x773   :  { %v582_v52 = vmul.f32 %v1002_v51, %v581_v50 }
 0x775   :  { %v583_v53 = vpack.c.bf16 %v582_v52, %v582_v52 }
 0x777   :  { %v585_v54 = vrot.slane %v583_v53, 2 }
 0x779   :  { %945 = vmatmul.mubr.msk.bf16.vlgmr.msra.gmra.mrb[12].mxu0 %vm184_vm4, %v585_v54 }
 0x77a   :  { %752 = vmatpush1.bf16.msra.mxu0 %v1127_v8  ;;  %783 = vmatprep.mubr.bf16.mxu0 %v1073_v0 }
 0x77b   :  { %753 = vmatprep.subr.bf16.mxu0 %v1130_v13 }
 0x77e   :  { %754 = vmatpush1.bf16.msra.mxu0 %v1133_v18 }
 0x77f   :  { %755 = vmatprep.subr.bf16.mxu0 %v1136_v23 }
 0x782   :  { %756 = vmatpush1.bf16.msra.mxu0 %v1140_v28 }
 0x783   :  { %757 = vmatprep.subr.bf16.mxu0 %v1143_v29 }
 0x786   :  { %758 = vmatpush1.bf16.msra.mxu0 %v1149_v32 }
 0x84c   :  { %v623_v55 = vpop.f32.mrb[12].mxu0 }
 0x84d   :  { %v632_v56 = vrot.slane %v623_v55, 3  ;;  %v625_v57 = vpop.f32.mrb[13].mxu0 }
 0x84e   :  { %v633_v61 = vrot.slane %v625_v57, 3  ;;  %v627_v2 = vpop.f32.mrb[14].mxu0 }
 0x84f   :  { %v636_v8 = vadd.f32 %v632_v56, %v1194_v58  ;;  %v628_v0 = vpop.f32.mrb[15].mxu0  ;;  %v71_v2 = vld [vmem:[#allocation4 + $0xb8] sm:$0xff] }
 0x850   :  { %v637_v13 = vadd.f32 %v633_v61, %v1206_v62 }
 0x851   :  { %1003 = vtanh.f32 %v636_v8  ;;  %v73_v8 = vld [vmem:[#allocation4 + $0xc8] sm:$0xff] }
 0x852   :  { %1005 = vtanh.f32 %v637_v13  ;;  %v949_v0 = vpack.c.bf16 %v73_v8, %v71_v2  ;;  %v70_v13 = vld [vmem:[#allocation4 + $0xb0] sm:$0xff] }
 0x854   :  { %950 = vmatprep.subr.bf16.mxu1 %v949_v0 }
 0x85b   :  { %v1004_v18 = vpop.eup %1003 }
 0x85c   :  { %v1006_v23 = vpop.eup %1005  ;;  %v640_v4 = vmul.f32 0.5, %v1004_v18  ;;  %v72_v18 = vld [vmem:[#allocation4 + $0xc0] sm:$0xff] }
 0x85d   :  { %v643_v28 = vrot.slane %v1006_v23, 1  ;;  %v660_v62 = vmul.f32 0.5, %v1006_v23 }
 0x85e   :  { %v641_v32 = vadd.f32 0.5, %v640_v4  ;;  %v951_v4 = vpack.c.bf16 %v72_v18, %v70_v13 }
 0x85f   :  { %v645_v29 = vsel %vm175_vm3, %v578_v49, %v643_v28  ;;  %v661_v12 = vadd.f32 0.5, %v660_v62 }
 0x860   :  { %v647_v5 = vrot.slane %v645_v29, 7 }
 0x862   :  { %v649_v6 = vmul.f32 %v647_v5, %v641_v32  ;;  %v75_v5 = vld [vmem:[#allocation4 + $0xd8] sm:$0xff] }
 0x864   :  { %v651_v9 = vrot.slane %v649_v6, 5 }
 0x866   :  { %653 = vrot.lane.b32.xlu1 %v651_v9, %s1074_s1 }
 0x8d8   :  { %v654_v10 = vpop.permute.xlu1 %653 }
 0x8d9   :  { %v656_v58 = vrot.slane %v654_v10, 3  ;;  %v76_v10 = vld [vmem:[#allocation4 + $0xe0] sm:$0xff] }
 0x8db   :  { %v658_v11 = vadd.f32 %v656_v58, %v649_v6  ;;  %v77_v6 = vld [vmem:[#allocation4 + $0xe8] sm:$0xff] }
 0x8dc   :  { %v953_v9 = vpack.c.bf16 %v77_v6, %v75_v5  ;;  %v81_v58 = vld [vmem:[#allocation4 + $0x108] sm:$0xff] }
 0x8dd   :  { %1007 = vtanh.f32 %v658_v11 }
 0x8e7   :  { %v1008_v14 = vpop.eup %1007 }
 0x8e8   :  { %v662_v15 = vmul.f32 %v1008_v14, %v661_v12 }
 0x8ea   :  { %v663_v16 = vpack.c.bf16 %v662_v15, %v662_v15  ;;  %v78_v15 = vld [vmem:[#allocation4 + $0xf0] sm:$0xff] }
 0x8ec   :  { %v665_v17 = vshrl.u32 %v663_v16, 16  ;;  %v80_v16 = vld [vmem:[#allocation4 + $0x100] sm:$0xff] }
 0x8ee   :  { %v667_v19 = vrot.slane %v665_v17, 2  ;;  %v83_v17 = vld [vmem:[#allocation4 + $0x118] sm:$0xff] }
 0x8f0   :  { %946 = vmatmul.mubr.msk.bf16.vlgmr.msra.gmra.mrb[12].mxu1 %vm184_vm4, %v667_v19 }
 0x8f1   :  { %952 = vmatpush1.bf16.msra.mxu1 %v951_v4 }
 0x8f2   :  { %954 = vmatprep.subr.bf16.mxu1 %v953_v9 }
 0x9c3   :  { %v705_v20 = vpop.f32.mrb[12].mxu1 }
 0x9c4   :  { %v714_v21 = vrot.slane %v705_v20, 2  ;;  %v707_v22 = vpop.f32.mrb[13].mxu1 }
 0x9c5   :  { %v715_v24 = vrot.slane %v707_v22, 2  ;;  %v709_v25 = vpop.f32.mrb[14].mxu1  ;;  %v959_v22 = vpack.c.bf16 %v80_v16, %v78_v15 }
 0x9c6   :  { %v718_v26 = vadd.f32 %v714_v21, %v1198_v59  ;;  %v710_v27 = vpop.f32.mrb[15].mxu1  ;;  %v85_v21 = vld [vmem:[#allocation4 + $0x128] sm:$0xff] }
 0x9c7   :  { %v719_v30 = vadd.f32 %v715_v24, %v1210_v63  ;;  %v961_v25 = vpack.c.bf16 %v85_v21, %v83_v17  ;;  %v84_v27 = vld [vmem:[#allocation4 + $0x120] sm:$0xff] }
 0x9c8   :  { %1009 = vtanh.f32 %v718_v26  ;;  %v82_v26 = vld [vmem:[#allocation4 + $0x110] sm:$0xff] }
 0x9c9   :  { %1011 = vtanh.f32 %v719_v30  ;;  %v963_v35 = vpack.c.bf16 %v84_v27, %v82_v26 }
 0x9d2   :  { %v1010_v31 = vpop.eup %1009 }
 0x9d3   :  { %v1012_v37 = vpop.eup %1011  ;;  %v722_v39 = vmul.f32 0.5, %v1010_v31 }
 0x9d4   :  { %v725_v40 = vrot.slane %v1012_v37, 1  ;;  %v742_v63 = vmul.f32 0.5, %v1012_v37 }
 0x9d5   :  { %v723_v42 = vadd.f32 0.5, %v722_v39 }
 0x9d6   :  { %v727_v41 = vsel %vm175_vm3, %v658_v11, %v725_v40  ;;  %v743_v48 = vadd.f32 0.5, %v742_v63  ;;  %v1075_v11 = vmov 0.0  }
 0x9d7   :  { %v729_v43 = vrot.slane %v727_v41, 7  ;;  %904 = vmatprep.mubr.f32.mxu1 %v1075_v11 }
 0x9d9   :  { %v731_v44 = vmul.f32 %v729_v43, %v723_v42 }
 0x9db   :  { %v733_v45 = vrot.slane %v731_v44, 6 }
 0x9dd   :  { %735 = vrot.lane.b32.xlu0 %v733_v45, %s1074_s1  ;;  %v87_v45 = vld [vmem:[#allocation4 + $0x130] ss:$8 sm:$0x3] }
 0x9de   :  { %v835_v63 = vrot.slane %v87_v45, %v97_v38 }
 0xa4f   :  { %v736_v46 = vpop.permute.xlu0 %735 }
 0xa50   :  { %v738_v59 = vrot.slane %v736_v46, 2  ;;  %v1076_v46 = vmov 1966171168  }
 0xa52   :  { %v740_v47 = vadd.f32 %v738_v59, %v731_v44  ;;  %v915_v59 = vunpack.c.l.s4 %v1076_v46 }
 0xa54   :  { %1013 = vtanh.f32 %v740_v47 }
 0xa5e   :  { %v1014_v3 = vpop.eup %1013 }
 0xa5f   :  { %v744_v49 = vmul.f32 %v1014_v3, %v743_v48  ;;  %v916_v48 = vunpack.c.0.s8 %v915_v59 }
 0xa61   :  { %v745_v7 = vpack.c.bf16 %v744_v49, %v744_v49 }
 0xa63   :  { %v747_v50 = vrot.slane %v745_v7, 3 }
 0xa65   :  { %947 = vmatmul.mubr.msk.bf16.vlgmr.msra.gmra.mrb[16].mxu0 %vm184_vm4, %v747_v50 }
 0xb38   :  { %v785_v51 = vpop.f32.mrb[16].mxu0 }
 0xb39   :  { %v794_v52 = vrot.slane %v785_v51, 1  ;;  %v787_v53 = vpop.f32.mrb[17].mxu0  ;;  %v919_v51 = vsub.s32 %v916_v48, %v1171_v34 }
 0xb3a   :  { %v795_v54 = vrot.slane %v787_v53, 1  ;;  %v789_v55 = vpop.f32.mrb[18].mxu0 }
 0xb3b   :  { %v798_v56 = vadd.f32 %v794_v52, %v1202_v60  ;;  %v790_v57 = vpop.f32.mrb[19].mxu0  ;;  %v74_v60 = vld [vmem:[#allocation4 + $0xd0] sm:$0xff] }
 0xb3c   :  { %v799_v61 = vadd.f32 %v795_v54, %v1214_v1  ;;  %v79_v1 = vld [vmem:[#allocation4 + $0xf8] sm:$0xff]  ;;  %v955_v12 = vpack.c.bf16 %v76_v10, %v74_v60 }
 0xb3d   :  { %1015 = vtanh.f32 %v798_v56  ;;  %v957_v14 = vpack.c.bf16 %v81_v58, %v79_v1 }
 0xb3e   :  { %1017 = vtanh.f32 %v799_v61  ;;  %956 = vmatpush1.bf16.msra.mxu1 %v955_v12 }
 0xb3f   :  { %958 = vmatprep.subr.bf16.mxu1 %v957_v14 }
 0xb42   :  { %960 = vmatpush1.bf16.msra.mxu1 %v959_v22 }
 0xb43   :  { %962 = vmatprep.subr.bf16.mxu1 %v961_v25 }
 0xb46   :  { %964 = vmatpush1.bf16.msra.mxu1 %v963_v35 }
 0xb47   :  { %v1016_v23 = vpop.eup %1015 }
 0xb48   :  { %v1018_v28 = vpop.eup %1017  ;;  %v802_v29 = vmul.f32 0.5, %v1016_v23 }
 0xb49   :  { %v805_v32 = vrot.slane %v1018_v28, 1  ;;  %v822_v40 = vmul.f32 0.5, %v1018_v28 }
 0xb4a   :  { %v803_v19 = vadd.f32 0.5, %v802_v29 }
 0xb4b   :  { %v807_v62 = vsel %vm175_vm3, %v740_v47, %v805_v32  ;;  %v823_v41 = vadd.f32 0.5, %v822_v40  ;;  %v831_v47 = vrot.slane %v87_v45, %v93_v36 }
 0xb4c   :  { %v809_v20 = vrot.slane %v807_v62, 7 }
 0xb4e   :  { %v811_v24 = vmul.f32 %v809_v20, %v803_v19 }
 0xb50   :  { %v813_v30 = vrot.slane %v811_v24, 7 }
 0xb52   :  { %815 = vrot.lane.b32.xlu1 %v813_v30, %s1074_s1 }
 0xbc4   :  { %v816_v31 = vpop.permute.xlu1 %815 }
 0xbc5   :  { %v818_v37 = vrot.slane %v816_v31, 1 }
 0xbc7   :  { %v820_v39 = vadd.f32 %v818_v37, %v811_v24 }
 0xbc9   :  { %1019 = vtanh.f32 %v820_v39 }
 0xbd3   :  { %v1020_v42 = vpop.eup %1019 }
 0xbd4   :  { %v824_v43 = vmul.f32 %v1020_v42, %v823_v41 }
 0xbd6   :  { %v826_v44 = vrot.slane %v824_v43, 7 }
 0xbd8   :  { %948 = vmatmul.mubr.msk.f32.vlgmr.msra.gmra.mrb[16].mxu1 %vm184_vm4, %v826_v44 }
 0xcab   :  { %v906_v3 = vpop.f32.mrb[16].mxu1 }
 0xcac   :  { %v907_v49 = vadd.f32 %v906_v3, %v831_v47  ;;  %v908_v7 = vpop.f32.mrb[17].mxu1 }
 0xcad   :  { %v909_v50 = vadd.f32 %v908_v7, %v835_v63 }
 0xcaf   :  { %v913_v52 = vcombine.low %v907_v49, %v909_v50 }
 0xcb1   :  { %v920_v53 = vrot.slane %v913_v52, %v919_v51 }
 0xcb3   :  { %v927_v54 = vrot.slane %v920_v53, %v919_v51 }
 0xcb5   :  { %933 = vst.msk [vmem:[%s1327_s2] sm:$0x3] %vm931_vm5, %v927_v54 }
 0xcb6   :  { %938 = vsyncpa [#allocation3], 1 }
 0xcb7   :  { %939 = vsyncpa [#allocation5], 1 }

</bundles_post_ra>
